<compile_context>
chip_gen: v6e
topology: v6e:2x2x1
jax: 0.10.0
libtpu: 0.0.40
codegen_flags: <defaults>
</compile_context>

<pallas_src>
import functools

import jax
import jax.numpy as jnp
from jax.experimental import pallas as pl
from jax.experimental.pallas import tpu as pltpu


def _round_up(v, m):
    return ((v + m - 1) // m) * m


def _layer(h, w_bf16, b_f32, slope):
    """y = LeakyReLU(h @ W + b); bf16 MXU matmul, f32 accumulate, f32 VPU select."""
    y = b_f32 + jnp.dot(h.astype(jnp.bfloat16), w_bf16,
                        preferred_element_type=jnp.float32)
    return jnp.where(y >= 0.0, y, slope * y)


def _make_kernel(num_hidden, negative_slope):
    slope = float(negative_slope)

    if num_hidden > 0:
        def kernel(x_ref, w0_ref, b0_ref, wh_ref, bh_ref, wo_ref, bo_ref, o_ref):
            h = _layer(x_ref[...], w0_ref[...], b0_ref[...], slope)
            # static (trace-time) unroll; activation stays a traced value,
            # never round-trips through a scratch buffer between layers.
            for l in range(num_hidden):
                h = _layer(h, wh_ref[l], bh_ref[l], slope)
            o = bo_ref[...] + jnp.dot(h.astype(jnp.bfloat16), wo_ref[...],
                                      preferred_element_type=jnp.float32)
            o_ref[...] = o.astype(o_ref.dtype)
    else:
        def kernel(x_ref, w0_ref, b0_ref, wo_ref, bo_ref, o_ref):
            h = _layer(x_ref[...], w0_ref[...], b0_ref[...], slope)
            o = bo_ref[...] + jnp.dot(h.astype(jnp.bfloat16), wo_ref[...],
                                      preferred_element_type=jnp.float32)
            o_ref[...] = o.astype(o_ref.dtype)

    return kernel


def _resident_spec(shape):
    """Grid-invariant operand: constant index_map + single pipeline buffer."""
    ndim = len(shape)
    return pl.BlockSpec(shape, lambda i, _n=ndim: (0,) * _n,
                        pipeline_mode=pl.Buffered(1))


def mlp_pallas(x_p, w0, b0, wh, bh, wo, bo, *, num_hidden, negative_slope,
               tb, vmem_limit_bytes):
    """x_p: (Bp, Dp) f32 padded input; all feature dims multiples of 128.
    Weights bf16, biases f32. wh/bh may be None when num_hidden == 0."""
    Bp, Dp = x_p.shape
    Hp = w0.shape[1]
    Op = wo.shape[1]

    kernel = _make_kernel(num_hidden, negative_slope)

    in_specs = [
        pl.BlockSpec((tb, Dp), lambda i: (i, 0)),   # x tile (double-buffered)
        _resident_spec((Dp, Hp)),                   # W0
        _resident_spec((1, Hp)),                    # b0
    ]
    args = [x_p, w0, b0]
    if num_hidden > 0:
        Lh = wh.shape[0]
        in_specs += [_resident_spec((Lh, Hp, Hp)),  # stacked hidden W
                     _resident_spec((Lh, 1, Hp))]   # stacked hidden b
        args += [wh, bh]
    in_specs += [_resident_spec((Hp, Op)),          # W_out
                 _resident_spec((1, Op))]           # b_out
    args += [wo, bo]

    return pl.pallas_call(
        kernel,
        out_shape=jax.ShapeDtypeStruct((Bp, Op), x_p.dtype),
        grid=(Bp // tb,),
        in_specs=in_specs,
        out_specs=pl.BlockSpec((tb, Op), lambda i: (i, 0)),
        compiler_params=pltpu.CompilerParams(
            dimension_semantics=("parallel",),
            vmem_limit_bytes=vmem_limit_bytes,
        ),
    )(*args)


class NeuralNetworkPallas:
    """JAX/Pallas port of PES/model.py NeuralNetwork (LeakyReLU MLP, eval mode)."""

    def __init__(self, input_dim, hidden_dim, num_layers, output_dim,
                 negative_slope=0.01, dropout_ratio=0.0, key=None):
        if num_layers < 1:
            raise ValueError("Number of layers must be at least 1")
        if key is None:
            key = jax.random.PRNGKey(0)
        self.input_dim = input_dim
        self.hidden_dim = hidden_dim
        self.num_layers = num_layers
        self.output_dim = output_dim
        self.negative_slope = negative_slope
        self.dropout_ratio = dropout_ratio
        # TODO(synk): dropout is only active in PyTorch train mode; inference
        # (eval) semantics = identity, which is what we implement here.

        # ---- unpadded f32 params (nn.Linear default init U(-1/sqrt(fan_in),..)) ----
        self.params = []
        dims = [input_dim] + [hidden_dim] * num_layers
        for li in range(num_layers):
            key, kw, kb = jax.random.split(key, 3)
            bound = 1.0 / float(dims[li]) ** 0.5
            w = jax.random.uniform(kw, (dims[li], dims[li + 1]),
                                   jnp.float32, -bound, bound)
            b = jax.random.uniform(kb, (1, dims[li + 1]),
                                   jnp.float32, -bound, bound)
            self.params.append((w, b))
        key, kw, kb = jax.random.split(key, 3)
        bound = 1.0 / float(hidden_dim) ** 0.5
        w_out = jax.random.uniform(kw, (hidden_dim, output_dim),
                                   jnp.float32, -bound, bound)
        b_out = jax.random.uniform(kb, (1, output_dim),
                                   jnp.float32, -bound, bound)
        self.out_params = (w_out, b_out)

        # ---- padded kernel params: weights bf16 (MXU-native), biases f32 ----
        self.Dp = _round_up(input_dim, 128)
        self.Hp = _round_up(hidden_dim, 128)
        self.Op = _round_up(output_dim, 128)
        self.num_hidden = num_layers - 1

        w0, b0 = self.params[0]
        w0_p = jnp.zeros((self.Dp, self.Hp), jnp.bfloat16)
        w0_p = w0_p.at[:input_dim, :hidden_dim].set(w0.astype(jnp.bfloat16))
        b0_p = jnp.zeros((1, self.Hp), jnp.float32)
        b0_p = b0_p.at[:, :hidden_dim].set(b0)

        if self.num_hidden > 0:
            wh_p = jnp.zeros((self.num_hidden, self.Hp, self.Hp), jnp.bfloat16)
            bh_p = jnp.zeros((self.num_hidden, 1, self.Hp), jnp.float32)
            for li, (w, b) in enumerate(self.params[1:]):
                wh_p = wh_p.at[li, :hidden_dim, :hidden_dim].set(
                    w.astype(jnp.bfloat16))
                bh_p = bh_p.at[li, :, :hidden_dim].set(b)
        else:
            wh_p, bh_p = None, None   # never passed to the kernel

        wo_p = jnp.zeros((self.Hp, self.Op), jnp.bfloat16)
        wo_p = wo_p.at[:hidden_dim, :output_dim].set(w_out.astype(jnp.bfloat16))
        bo_p = jnp.zeros((1, self.Op), jnp.float32)
        bo_p = bo_p.at[:, :output_dim].set(b_out)

        self.padded = (w0_p, b0_p, wh_p, bh_p, wo_p, bo_p)

    # ---- batch-tile heuristic (v7x: >=2 grid steps for megacore; v6e: big tiles) ----
    def _pick_tb(self, B):
        B8 = _round_up(B, 8)
        if B8 <= 16:
            return B8
        # at least 2 grid steps so both v7x TensorCores get work; cap at 512 rows
        # (per-step overhead amortized, fits comfortably in VMEM at these dims).
        return min(512, _round_up((B8 + 1) // 2, 8))

    def _vmem_limit(self, tb):
        Lh = self.num_hidden
        est = (self.Dp * self.Hp * 2                    # W0 (bf16, single buffer)
               + Lh * self.Hp * self.Hp * 2             # hidden W stack
               + self.Hp * self.Op * 2                  # W_out
               + (self.Hp + Lh * self.Hp + self.Op) * 4  # f32 biases
               + 2 * tb * self.Dp * 4                   # x tile, double-buffered
               + 2 * tb * self.Op * 4                   # out tile, double-buffered
               + 4 * tb * self.Hp * 4)                  # live activation + headroom
        # keep within every generation's physical VMEM (v7x = 64 MiB per TC)
        return int(min(60 * 2**20, max(32 * 2**20, 2 * est)))

    def __call__(self, x):
        B = x.shape[0]
        tb = self._pick_tb(B)
        Bp = _round_up(_round_up(B, 8), tb)
        x_p = jnp.pad(x, ((0, Bp - B), (0, self.Dp - self.input_dim)))

        out_p = mlp_pallas(x_p, *self.padded,
                           num_hidden=self.num_hidden,
                           negative_slope=self.negative_slope,
                           tb=tb,
                           vmem_limit_bytes=self._vmem_limit(tb))
        return out_p[:B, :self.output_dim]


def _reference(model, x):
    """Pure-JAX reference emulating the kernel's numerics (bf16 MXU, f32 acc)."""
    h = x
    for (w, b) in model.params:
        y = b + jnp.dot(h.astype(jnp.bfloat16), w.astype(jnp.bfloat16),
                        preferred_element_type=jnp.float32)
        h = jnp.where(y >= 0.0, y, model.negative_slope * y)
    w_out, b_out = model.out_params
    return b_out + jnp.dot(h.astype(jnp.bfloat16), w_out.astype(jnp.bfloat16),
                           preferred_element_type=jnp.float32)


if __name__ == "__main__":
    key = jax.random.PRNGKey(0)
    k_in, k_model = jax.random.split(key)

    batch = 8
    input_dim = 16
    hidden_dim = 32
    num_layers = 3
    output_dim = 4

    x = jax.random.normal(k_in, (batch, input_dim), jnp.float32)
    model = NeuralNetworkPallas(input_dim, hidden_dim, num_layers, output_dim,
                                negative_slope=0.01, dropout_ratio=0.0,
                                key=k_model)

    out = model(x)
    out = jax.block_until_ready(out)

    ref = _reference(model, x)
    assert out.shape == (batch, output_dim)
    assert jnp.allclose(out, ref, atol=1e-3, rtol=1e-3), (
        f"max abs err {jnp.max(jnp.abs(out - ref))}")

    # also exercise the num_layers == 1 path (no hidden-weight slab passed)
    model1 = NeuralNetworkPallas(input_dim, hidden_dim, 1, output_dim,
                                 negative_slope=0.01, key=jax.random.PRNGKey(7))
    out1 = jax.block_until_ready(model1(x))
    assert jnp.allclose(out1, _reference(model1, x), atol=1e-3, rtol=1e-3)

    print("KERNEL_OK")
</pallas_src>

<mosaic_0001>
module attributes {stable_mosaic.version = 11 : i64} {
  func.func @kernel(%arg0: i32, %arg1: memref<8x128xf32, #tpu.memory_space<vmem>>, %arg2: memref<128x128xbf16, #tpu.memory_space<vmem>>, %arg3: memref<1x128xf32, #tpu.memory_space<vmem>>, %arg4: memref<2x128x128xbf16, #tpu.memory_space<vmem>>, %arg5: memref<2x1x128xf32, #tpu.memory_space<vmem>>, %arg6: memref<128x128xbf16, #tpu.memory_space<vmem>>, %arg7: memref<1x128xf32, #tpu.memory_space<vmem>>, %arg8: memref<8x128xf32, #tpu.memory_space<vmem>>) attributes {dimension_semantics = [#tpu.dimension_semantics<parallel>], iteration_bounds = array<i64: 1>, scalar_prefetch = 0 : i64, scratch_operands = 0 : i64, tpu.core_type = #tpu.core_type<tc>, window_params = [{transform_indices = @transform_0, window_bounds = array<i64: 8, 128>}, {pipeline_mode = #tpu.pipeline_mode<synchronous>, transform_indices = @transform_1, window_bounds = array<i64: 128, 128>}, {pipeline_mode = #tpu.pipeline_mode<synchronous>, transform_indices = @transform_2, window_bounds = array<i64: 1, 128>}, {pipeline_mode = #tpu.pipeline_mode<synchronous>, transform_indices = @transform_3, window_bounds = array<i64: 2, 128, 128>}, {pipeline_mode = #tpu.pipeline_mode<synchronous>, transform_indices = @transform_4, window_bounds = array<i64: 2, 1, 128>}, {pipeline_mode = #tpu.pipeline_mode<synchronous>, transform_indices = @transform_5, window_bounds = array<i64: 128, 128>}, {pipeline_mode = #tpu.pipeline_mode<synchronous>, transform_indices = @transform_6, window_bounds = array<i64: 1, 128>}, {transform_indices = @transform_7, window_bounds = array<i64: 8, 128>}]} {
    %c0 = arith.constant 0 : index
    %c0_0 = arith.constant 0 : index
    %0 = vector.load %arg1[%c0, %c0_0] : memref<8x128xf32, #tpu.memory_space<vmem>>, vector<8x128xf32>
    %c0_1 = arith.constant 0 : index
    %c0_2 = arith.constant 0 : index
    %1 = vector.load %arg2[%c0_1, %c0_2] : memref<128x128xbf16, #tpu.memory_space<vmem>>, vector<128x128xbf16>
    %c0_3 = arith.constant 0 : index
    %c0_4 = arith.constant 0 : index
    %2 = vector.load %arg3[%c0_3, %c0_4] : memref<1x128xf32, #tpu.memory_space<vmem>>, vector<1x128xf32>
    %3 = arith.truncf %0 : vector<8x128xf32> to vector<8x128xbf16>
    %cst = arith.constant dense<0.000000e+00> : vector<8x128xf32>
    %4 = tpu.matmul %3, %1, %cst {dimension_numbers = #tpu.dot_dimension_numbers<[1], [0], [0], [1], [0, 0, 1, 1], [], []>} : vector<8x128xbf16>, vector<128x128xbf16>, vector<8x128xf32> -> vector<8x128xf32>
    %5 = vector.broadcast %2 : vector<1x128xf32> to vector<8x128xf32>
    %6 = arith.addf %5, %4 : vector<8x128xf32>
    %cst_5 = arith.constant 0.000000e+00 : f32
    %7 = vector.broadcast %cst_5 : f32 to vector<8x128xf32>
    %8 = arith.cmpf oge, %6, %7 : vector<8x128xf32>
    %cst_6 = arith.constant 0.00999999977 : f32
    %9 = vector.broadcast %cst_6 : f32 to vector<8x128xf32>
    %10 = arith.mulf %9, %6 : vector<8x128xf32>
    %11 = arith.select %8, %6, %10 : vector<8x128xi1>, vector<8x128xf32>
    %c0_7 = arith.constant 0 : index
    %c0_8 = arith.constant 0 : index
    %c0_9 = arith.constant 0 : index
    %12 = vector.load %arg4[%c0_7, %c0_8, %c0_9] : memref<2x128x128xbf16, #tpu.memory_space<vmem>>, vector<1x128x128xbf16>
    %13 = vector.shape_cast %12 : vector<1x128x128xbf16> to vector<128x128xbf16>
    %c0_10 = arith.constant 0 : index
    %c0_11 = arith.constant 0 : index
    %c0_12 = arith.constant 0 : index
    %14 = vector.load %arg5[%c0_10, %c0_11, %c0_12] : memref<2x1x128xf32, #tpu.memory_space<vmem>>, vector<1x1x128xf32>
    %15 = vector.shape_cast %14 : vector<1x1x128xf32> to vector<1x128xf32>
    %16 = arith.truncf %11 : vector<8x128xf32> to vector<8x128xbf16>
    %cst_13 = arith.constant dense<0.000000e+00> : vector<8x128xf32>
    %17 = tpu.matmul %16, %13, %cst_13 {dimension_numbers = #tpu.dot_dimension_numbers<[1], [0], [0], [1], [0, 0, 1, 1], [], []>} : vector<8x128xbf16>, vector<128x128xbf16>, vector<8x128xf32> -> vector<8x128xf32>
    %18 = vector.broadcast %15 : vector<1x128xf32> to vector<8x128xf32>
    %19 = arith.addf %18, %17 : vector<8x128xf32>
    %cst_14 = arith.constant 0.000000e+00 : f32
    %20 = vector.broadcast %cst_14 : f32 to vector<8x128xf32>
    %21 = arith.cmpf oge, %19, %20 : vector<8x128xf32>
    %cst_15 = arith.constant 0.00999999977 : f32
    %22 = vector.broadcast %cst_15 : f32 to vector<8x128xf32>
    %23 = arith.mulf %22, %19 : vector<8x128xf32>
    %24 = arith.select %21, %19, %23 : vector<8x128xi1>, vector<8x128xf32>
    %c1 = arith.constant 1 : index
    %c0_16 = arith.constant 0 : index
    %c0_17 = arith.constant 0 : index
    %25 = vector.load %arg4[%c1, %c0_16, %c0_17] : memref<2x128x128xbf16, #tpu.memory_space<vmem>>, vector<1x128x128xbf16>
    %26 = vector.shape_cast %25 : vector<1x128x128xbf16> to vector<128x128xbf16>
    %c1_18 = arith.constant 1 : index
    %c0_19 = arith.constant 0 : index
    %c0_20 = arith.constant 0 : index
    %27 = vector.load %arg5[%c1_18, %c0_19, %c0_20] : memref<2x1x128xf32, #tpu.memory_space<vmem>>, vector<1x1x128xf32>
    %28 = vector.shape_cast %27 : vector<1x1x128xf32> to vector<1x128xf32>
    %29 = arith.truncf %24 : vector<8x128xf32> to vector<8x128xbf16>
    %cst_21 = arith.constant dense<0.000000e+00> : vector<8x128xf32>
    %30 = tpu.matmul %29, %26, %cst_21 {dimension_numbers = #tpu.dot_dimension_numbers<[1], [0], [0], [1], [0, 0, 1, 1], [], []>} : vector<8x128xbf16>, vector<128x128xbf16>, vector<8x128xf32> -> vector<8x128xf32>
    %31 = vector.broadcast %28 : vector<1x128xf32> to vector<8x128xf32>
    %32 = arith.addf %31, %30 : vector<8x128xf32>
    %cst_22 = arith.constant 0.000000e+00 : f32
    %33 = vector.broadcast %cst_22 : f32 to vector<8x128xf32>
    %34 = arith.cmpf oge, %32, %33 : vector<8x128xf32>
    %cst_23 = arith.constant 0.00999999977 : f32
    %35 = vector.broadcast %cst_23 : f32 to vector<8x128xf32>
    %36 = arith.mulf %35, %32 : vector<8x128xf32>
    %37 = arith.select %34, %32, %36 : vector<8x128xi1>, vector<8x128xf32>
    %c0_24 = arith.constant 0 : index
    %c0_25 = arith.constant 0 : index
    %38 = vector.load %arg7[%c0_24, %c0_25] : memref<1x128xf32, #tpu.memory_space<vmem>>, vector<1x128xf32>
    %39 = arith.truncf %37 : vector<8x128xf32> to vector<8x128xbf16>
    %c0_26 = arith.constant 0 : index
    %c0_27 = arith.constant 0 : index
    %40 = vector.load %arg6[%c0_26, %c0_27] : memref<128x128xbf16, #tpu.memory_space<vmem>>, vector<128x128xbf16>
    %cst_28 = arith.constant dense<0.000000e+00> : vector<8x128xf32>
    %41 = tpu.matmul %39, %40, %cst_28 {dimension_numbers = #tpu.dot_dimension_numbers<[1], [0], [0], [1], [0, 0, 1, 1], [], []>} : vector<8x128xbf16>, vector<128x128xbf16>, vector<8x128xf32> -> vector<8x128xf32>
    %42 = vector.broadcast %38 : vector<1x128xf32> to vector<8x128xf32>
    %43 = arith.addf %42, %41 : vector<8x128xf32>
    %c0_29 = arith.constant 0 : index
    %c0_30 = arith.constant 0 : index
    %44 = vector.load %arg8[%c0_29, %c0_30] : memref<8x128xf32, #tpu.memory_space<vmem>>, vector<8x128xf32>
    tpu.vector_store %arg8[%c0_29, %c0_30], %43 {strides = array<i32>} : memref<8x128xf32, #tpu.memory_space<vmem>>, vector<8x128xf32>,
    return
  }
  func.func @transform_0(%arg0: i32) -> (i32, i32) {
    %c0_i32 = arith.constant 0 : i32
    %c0_i32_0 = arith.constant 0 : i32
    return %arg0, %c0_i32 : i32, i32
  }
  func.func @transform_1(%arg0: i32) -> (i32, i32) {
    %c0_i32 = arith.constant 0 : i32
    %c0_i32_0 = arith.constant 0 : i32
    %c0_i32_1 = arith.constant 0 : i32
    return %c0_i32, %c0_i32_0 : i32, i32
  }
  func.func @transform_2(%arg0: i32) -> (i32, i32) {
    %c0_i32 = arith.constant 0 : i32
    %c0_i32_0 = arith.constant 0 : i32
    %c0_i32_1 = arith.constant 0 : i32
    return %c0_i32, %c0_i32_0 : i32, i32
  }
  func.func @transform_3(%arg0: i32) -> (i32, i32, i32) {
    %c0_i32 = arith.constant 0 : i32
    %c0_i32_0 = arith.constant 0 : i32
    %c0_i32_1 = arith.constant 0 : i32
    %c0_i32_2 = arith.constant 0 : i32
    return %c0_i32, %c0_i32_0, %c0_i32_1 : i32, i32, i32
  }
  func.func @transform_4(%arg0: i32) -> (i32, i32, i32) {
    %c0_i32 = arith.constant 0 : i32
    %c0_i32_0 = arith.constant 0 : i32
    %c0_i32_1 = arith.constant 0 : i32
    %c0_i32_2 = arith.constant 0 : i32
    return %c0_i32, %c0_i32_0, %c0_i32_1 : i32, i32, i32
  }
  func.func @transform_5(%arg0: i32) -> (i32, i32) {
    %c0_i32 = arith.constant 0 : i32
    %c0_i32_0 = arith.constant 0 : i32
    %c0_i32_1 = arith.constant 0 : i32
    return %c0_i32, %c0_i32_0 : i32, i32
  }
  func.func @transform_6(%arg0: i32) -> (i32, i32) {
    %c0_i32 = arith.constant 0 : i32
    %c0_i32_0 = arith.constant 0 : i32
    %c0_i32_1 = arith.constant 0 : i32
    return %c0_i32, %c0_i32_0 : i32, i32
  }
  func.func @transform_7(%arg0: i32) -> (i32, i32) {
    %c0_i32 = arith.constant 0 : i32
    %c0_i32_0 = arith.constant 0 : i32
    return %arg0, %c0_i32 : i32, i32
  }
}

</mosaic_0001>

<bundles_post_ra>
// kernel: tpu_custom_call.1
= control target key start
LH: loop header
LB: loop body
LE: loop exit
PB: predicated region body
PF: predicated region fallthrough
CT: control target
= control target key end

     0   :  { %12 = vsyncpa [#allocation3], 0  ;;  %s990_s0 = inlined_call_operand.hbm [shape: f32[8,128], index: 0, kind: input, shape index: {}]   ;;  %s991_s1 = inlined_call_operand.hbm [shape: bf16[128,128], index: 1, kind: input, shape index: {}]   ;;  %s992_s2 = inlined_call_operand.vmem [shape: f32[1,128], index: 2, kind: input, shape index: {}]   ;;  %s993_s3 = inlined_call_operand.hbm [shape: bf16[2,128,128], index: 3, kind: input, shape index: {}]   ;;  %s994_s4 = inlined_call_operand.vmem [shape: f32[2,1,128], index: 4, kind: input, shape index: {}]   ;;  %s995_s5 = inlined_call_operand.hbm [shape: bf16[128,128], index: 5, kind: input, shape index: {}]   ;;  %s996_s6 = inlined_call_operand.vmem [shape: f32[1,128], index: 6, kind: input, shape index: {}]   ;;  %s997_s7 = inlined_call_operand.hbm [shape: f32[8,128], index: 7, kind: output, shape index: {}]  }
   0x1   :  { %13 = vsyncpa [#allocation6], 0 }
   0x2   :  { %14 = vsyncpa [#allocation9], 0 }
   0x3   :  { %15 = vsyncpa [#allocation4], 0  ;;  %s865_s24 = smov [#allocation5]  }
   0x4   :  { %s31_s25 = sshll.u32 %s865_s24, 4  ;;  %s32_s25 = int_to_ptr.vmem [resolvable:$true] %s31_s25 }
   0x5   :  { %s765_s26 = scalar_lea.vmem %s32_s25, 1024  ;;  %p770_p1 = scmp.lt.s32.totalorder %s32_s25, %s32_s25 }
   0x6   :  { %p766_p0 = scmp.ne.s32.totalorder %s32_s25, %s765_s26  ;;  %p771_p2 = scmp.lt.s32.totalorder %s765_s26, %s765_s26 }
   0x8   :  { %p772_p3 = por %p771_p2, %p770_p1 }
   0xa   :  { %p773_p4 = pnand %p772_p3, %p766_p0 }
   0xc   :  { %776 = shalt.err (!%p773_p4)
}
   0xd   :  { %s866_s27 = smov 64   ;;  %s867_s28 = smov 4  }
   0xe   :  { %37 = dma.hbm_to_vmem [thread:$0]  %s991_s1, 1024, %s32_s25, [#allocation6], %s866_s27, %s866_s27, %s867_s28  }
   0xf   :  { %s868_s8 = smov [#allocation2]   ;;  %s869_s10 = smov [#allocation7]  }
  0x10   :  { %s22_s9 = sshll.u32 %s868_s8, 4  ;;  %s45_s11 = sshll.u32 %s869_s10, 4  ;;  %s23_s9 = int_to_ptr.vmem [resolvable:$true] %s22_s9  ;;  %s46_s11 = int_to_ptr.vmem [resolvable:$true] %s45_s11 }
  0x11   :  { %s785_s12 = scalar_lea.vmem %s23_s9, 128  ;;  %p790_p6 = scmp.lt.s32.totalorder %s23_s9, %s23_s9 }
  0x12   :  { %p786_p5 = scmp.ne.s32.totalorder %s23_s9, %s785_s12  ;;  %p791_p7 = scmp.lt.s32.totalorder %s785_s12, %s785_s12 }
  0x14   :  { %p792_p8 = por %p791_p7, %p790_p6 }
  0x16   :  { %p793_p9 = pnand %p792_p8, %p786_p5 }
  0x18   :  { %796 = shalt.err (!%p793_p9)
}
  0x19   :  { %25 = dma.hbm_to_vmem [thread:$0]  %s990_s0, 128, %s23_s9, [#allocation3]  }
  0x1a   :  { %s805_s15 = scalar_lea.vmem %s46_s11, 2048  ;;  %p810_p11 = scmp.lt.s32.totalorder %s46_s11, %s46_s11 }
  0x1b   :  { %p806_p10 = scmp.ne.s32.totalorder %s46_s11, %s805_s15  ;;  %p811_p12 = scmp.lt.s32.totalorder %s805_s15, %s805_s15 }
  0x1d   :  { %p812_p13 = por %p811_p12, %p810_p11 }
  0x1f   :  { %p813_p0 = pnand %p812_p13, %p806_p10 }
  0x21   :  { %816 = shalt.err (!%p813_p0)
}
  0x22   :  { %51 = dma.hbm_to_vmem [thread:$0]  %s993_s3, 2048, %s46_s11, [#allocation6], %s866_s27, %s866_s27, %s867_s28  }
  0x23   :  { %s870_s17 = smov [#allocation8]  }
  0x24   :  { %s59_s18 = sshll.u32 %s870_s17, 4  ;;  %s60_s18 = int_to_ptr.vmem [resolvable:$true] %s59_s18 }
  0x25   :  { %s825_s19 = scalar_lea.vmem %s60_s18, 1024  ;;  %p830_p2 = scmp.lt.s32.totalorder %s60_s18, %s60_s18 }
  0x26   :  { %p826_p1 = scmp.ne.s32.totalorder %s60_s18, %s825_s19  ;;  %p831_p3 = scmp.lt.s32.totalorder %s825_s19, %s825_s19 }
  0x28   :  { %p832_p4 = por %p831_p3, %p830_p2 }
  0x2a   :  { %p833_p5 = pnand %p832_p4, %p826_p1 }
  0x2c   :  { %836 = shalt.err (!%p833_p5)
}
  0x2d   :  { %65 = dma.hbm_to_vmem [thread:$0]  %s995_s5, 1024, %s60_s18, [#allocation9], %s866_s27, %s866_s27, %s867_s28  }
  0x2e   :  { %857 = dma.done.wait [#allocation3], 128  }
  0x2f   :  { %858 = vsyncadd [#allocation3], 4294967168 }
  0x30   :  { %859 = dma.done.wait [#allocation6], 3072  }
  0x31   :  { %860 = vsyncadd [#allocation6], 4294964224 }
  0x32   :  { %861 = dma.done.wait [#allocation9], 1024  }
  0x33   :  { %862 = vsyncadd [#allocation9], 4294966272  ;;  %v871_v0 = vmov 0.0   ;;  %vm872_vm0 = vmmov 0   ;;  %v725_v1 = vld [vmem:[#allocation5 + $0x38] sm:$0xff]   ;;  %v726_v2 = vld [vmem:[#allocation5 + $0x30] sm:$0xff]  }
  0x34   :  { %636 = vmatprep.subr.bf16.mxu0 %v871_v0  ;;  %652 = vmatprep.mubr.msk.bf16.mxu0 %vm872_vm0, %v871_v0  ;;  %v727_v3 = vld [vmem:[#allocation5 + $0x28] sm:$0xff]   ;;  %v733_v4 = vld [vmem:[#allocation7 + $0x38] sm:$0xff]   ;;  %v728_v5 = vld [vmem:[#allocation5 + $0x20] sm:$0xff]   ;;  %s873_s26 = smov [#allocation10]  }
  0x35   :  { %656 = vmatprep.subr.bf16.mxu1 %v871_v0  ;;  %672 = vmatprep.mubr.msk.bf16.mxu1 %vm872_vm0, %v871_v0  ;;  %v734_v6 = vld [vmem:[#allocation7 + $0x30] sm:$0xff]   ;;  %v729_v7 = vld [vmem:[#allocation5 + $0x18] sm:$0xff]   ;;  %v735_v8 = vld [vmem:[#allocation7 + $0x28] sm:$0xff]   ;;  %s552_s27 = sshll.u32 %s873_s26, 4  ;;  %s553_s27 = int_to_ptr.vmem [resolvable:$true] %s552_s27 }
  0x36   :  { %637 = vmatpush3.bf16.msra.mxu0 %v725_v1  ;;  %657 = vmatpush3.bf16.msra.mxu1 %v733_v4  ;;  %v730_v9 = vld [vmem:[#allocation5 + $0x10] sm:$0xff]   ;;  %v736_v10 = vld [vmem:[#allocation7 + $0x20] sm:$0xff]   ;;  %v731_v11 = vld [vmem:[#allocation5 + $0x8] sm:$0xff]   ;;  %p842_p7 = scmp.lt.s32.totalorder %s553_s27, %s553_s27 }
  0x37   :  { %638 = vmatprep.subr.bf16.mxu0 %v871_v0  ;;  %658 = vmatprep.subr.bf16.mxu1 %v871_v0  ;;  %v737_v12 = vld [vmem:[#allocation7 + $0x18] sm:$0xff]   ;;  %v732_v13 = vld [vmem:[#allocation5] sm:$0xff]   ;;  %v738_v15 = vld [vmem:[#allocation7 + $0x10] sm:$0xff]  }
  0x38   :  { %v81_v14 = vld [vmem:[#allocation2] sm:$0xff]  ;;  %v739_v17 = vld [vmem:[#allocation7 + $0x8] sm:$0xff]   ;;  %v740_v18 = vld [vmem:[#allocation7] sm:$0xff]  }
  0x39   :  { %v99_v16 = vpack.c.bf16 %v81_v14, %v81_v14  ;;  %v741_v19 = vld [vmem:[#allocation7 + $0x78] sm:$0xff]   ;;  %v742_v20 = vld [vmem:[#allocation7 + $0x70] sm:$0xff]   ;;  %v743_v21 = vld [vmem:[#allocation7 + $0x68] sm:$0xff]  }
  0x3a   :  { %639 = vmatpush3.bf16.msra.mxu0 %v726_v2  ;;  %659 = vmatpush3.bf16.msra.mxu1 %v734_v6  ;;  %v744_v22 = vld [vmem:[#allocation7 + $0x60] sm:$0xff]   ;;  %v745_v23 = vld [vmem:[#allocation7 + $0x58] sm:$0xff]   ;;  %v746_v24 = vld [vmem:[#allocation7 + $0x50] sm:$0xff]  }
  0x3b   :  { %640 = vmatprep.subr.bf16.mxu0 %v871_v0  ;;  %660 = vmatprep.subr.bf16.mxu1 %v871_v0  ;;  %v571_v25 = vld [vmem:[%s992_s2] ss:$0 sm:$0xff]  ;;  %v747_v34 = vld [vmem:[#allocation7 + $0x48] sm:$0xff]   ;;  %v748_v35 = vld [vmem:[#allocation7 + $0x40] sm:$0xff]  }
  0x3c   :  { %v749_v36 = vld [vmem:[#allocation8 + $0x38] sm:$0xff]   ;;  %v750_v37 = vld [vmem:[#allocation8 + $0x30] sm:$0xff]   ;;  %v751_v38 = vld [vmem:[#allocation8 + $0x28] sm:$0xff]  }
  0x3d   :  { %v752_v39 = vld [vmem:[#allocation8 + $0x20] sm:$0xff]   ;;  %v753_v40 = vld [vmem:[#allocation8 + $0x18] sm:$0xff]   ;;  %v754_v41 = vld [vmem:[#allocation8 + $0x10] sm:$0xff]  }
  0x3e   :  { %641 = vmatpush3.bf16.msra.mxu0 %v727_v3  ;;  %661 = vmatpush3.bf16.msra.mxu1 %v735_v8  ;;  %v580_v42 = vld [vmem:[%s994_s4] ss:$0 sm:$0xff]  ;;  %v755_v51 = vld [vmem:[#allocation8 + $0x8] sm:$0xff]   ;;  %v756_v52 = vld [vmem:[#allocation8] sm:$0xff]  }
  0x3f   :  { %642 = vmatprep.subr.bf16.mxu0 %v871_v0  ;;  %662 = vmatprep.subr.bf16.mxu1 %v871_v0  ;;  %v590_v53 = vld [vmem:[%s994_s4 + $0x1] ss:$0 sm:$0xff]  ;;  %v599_v62 = vld [vmem:[%s996_s6] ss:$0 sm:$0xff]  ;;  %s837_s4 = scalar_lea.vmem %s553_s27, 128 }
  0x40   :  { %p838_p6 = scmp.ne.s32.totalorder %s553_s27, %s837_s4  ;;  %p843_p8 = scmp.lt.s32.totalorder %s837_s4, %s837_s4 }
  0x42   :  { %643 = vmatpush3.bf16.msra.mxu0 %v728_v5  ;;  %663 = vmatpush3.bf16.msra.mxu1 %v736_v10  ;;  %p844_p9 = por %p843_p8, %p842_p7 }
  0x43   :  { %644 = vmatprep.subr.bf16.mxu0 %v871_v0  ;;  %664 = vmatprep.subr.bf16.mxu1 %v871_v0 }
  0x44   :  { %p845_p10 = pnand %p844_p9, %p838_p6 }
  0x46   :  { %645 = vmatpush3.bf16.msra.mxu0 %v729_v7  ;;  %665 = vmatpush3.bf16.msra.mxu1 %v737_v12 }
  0x47   :  { %646 = vmatprep.subr.bf16.mxu0 %v871_v0  ;;  %666 = vmatprep.subr.bf16.mxu1 %v871_v0 }
  0x4a   :  { %647 = vmatpush3.bf16.msra.mxu0 %v730_v9  ;;  %667 = vmatpush3.bf16.msra.mxu1 %v738_v15 }
  0x4b   :  { %648 = vmatprep.subr.bf16.mxu0 %v871_v0  ;;  %668 = vmatprep.subr.bf16.mxu1 %v871_v0 }
  0x4e   :  { %649 = vmatpush3.bf16.msra.mxu0 %v731_v11  ;;  %669 = vmatpush3.bf16.msra.mxu1 %v739_v17 }
  0x4f   :  { %650 = vmatprep.subr.bf16.mxu0 %v871_v0  ;;  %670 = vmatprep.subr.bf16.mxu1 %v871_v0 }
  0x52   :  { %651 = vmatpush3.bf16.msra.mxu0 %v732_v13  ;;  %671 = vmatpush3.bf16.msra.mxu1 %v740_v18 }
  0x53   :  { %676 = vmatprep.subr.bf16.mxu0 %v871_v0  ;;  %696 = vmatprep.subr.bf16.mxu1 %v871_v0 }
  0x55   :  { %653 = vmatmul.mubr.bf16.vlgmr.msra.gmra.mxu0 %v99_v16 }
  0x56   :  { %692 = vmatprep.mubr.msk.bf16.mxu0 %vm872_vm0, %v871_v0  ;;  %677 = vmatpush3.bf16.msra.mxu0 %v741_v19 }
  0x57   :  { %678 = vmatprep.subr.bf16.mxu0 %v871_v0 }
  0x5a   :  { %679 = vmatpush3.bf16.msra.mxu0 %v742_v20 }
  0x5b   :  { %680 = vmatprep.subr.bf16.mxu0 %v871_v0 }
  0x5e   :  { %681 = vmatpush3.bf16.msra.mxu0 %v743_v21 }
  0x5f   :  { %682 = vmatprep.subr.bf16.mxu0 %v871_v0 }
  0x62   :  { %683 = vmatpush3.bf16.msra.mxu0 %v744_v22 }
  0x63   :  { %684 = vmatprep.subr.bf16.mxu0 %v871_v0 }
  0x66   :  { %685 = vmatpush3.bf16.msra.mxu0 %v745_v23 }
  0x67   :  { %686 = vmatprep.subr.bf16.mxu0 %v871_v0 }
  0x6a   :  { %687 = vmatpush3.bf16.msra.mxu0 %v746_v24 }
  0x6b   :  { %688 = vmatprep.subr.bf16.mxu0 %v871_v0 }
  0x6e   :  { %689 = vmatpush3.bf16.msra.mxu0 %v747_v34 }
  0x6f   :  { %690 = vmatprep.subr.bf16.mxu0 %v871_v0 }
  0x72   :  { %691 = vmatpush3.bf16.msra.mxu0 %v748_v35 }
 0x115   :  { %v182_v26 = vpop.f32.mrf.mxu0 }
 0x116   :  { %v194_v27 = vadd.f32 %v571_v25, %v182_v26 }
 0x117   :  { %v654_v28 = vpop.f32.mrf.mxu0 }
 0x118   :  { %vm195_vm1 = vcmp.ge.f32.partialorder %v194_v27, 0.0  ;;  %v196_v29 = vmul.f32 0.01, %v194_v27 }
 0x119   :  { %v185_v30 = vpop.f32.mrf.mxu0 }
 0x11a   :  { %v197_v31 = vsel %vm195_vm1, %v194_v27, %v196_v29 }
 0x11b   :  { %v655_v32 = vpop.f32.mrf.mxu0  ;;  %v215_v33 = vpack.c.bf16 %v197_v31, %v197_v31 }
 0x11d   :  { %673 = vmatmul.mubr.bf16.vlgmr.msra.gmra.mxu1 %v215_v33 }
 0x11e   :  { %712 = vmatprep.mubr.msk.bf16.mxu1 %vm872_vm0, %v871_v0  ;;  %697 = vmatpush3.bf16.msra.mxu1 %v749_v36 }
 0x11f   :  { %698 = vmatprep.subr.bf16.mxu1 %v871_v0 }
 0x122   :  { %699 = vmatpush3.bf16.msra.mxu1 %v750_v37 }
 0x123   :  { %700 = vmatprep.subr.bf16.mxu1 %v871_v0 }
 0x126   :  { %701 = vmatpush3.bf16.msra.mxu1 %v751_v38 }
 0x127   :  { %702 = vmatprep.subr.bf16.mxu1 %v871_v0 }
 0x12a   :  { %703 = vmatpush3.bf16.msra.mxu1 %v752_v39 }
 0x12b   :  { %704 = vmatprep.subr.bf16.mxu1 %v871_v0 }
 0x12e   :  { %705 = vmatpush3.bf16.msra.mxu1 %v753_v40 }
 0x12f   :  { %706 = vmatprep.subr.bf16.mxu1 %v871_v0 }
 0x132   :  { %707 = vmatpush3.bf16.msra.mxu1 %v754_v41 }
 0x133   :  { %708 = vmatprep.subr.bf16.mxu1 %v871_v0 }
 0x136   :  { %709 = vmatpush3.bf16.msra.mxu1 %v755_v51 }
 0x137   :  { %710 = vmatprep.subr.bf16.mxu1 %v871_v0 }
 0x13a   :  { %711 = vmatpush3.bf16.msra.mxu1 %v756_v52 }
 0x1dd   :  { %v298_v43 = vpop.f32.mrf.mxu1 }
 0x1de   :  { %v310_v44 = vadd.f32 %v580_v42, %v298_v43 }
 0x1df   :  { %v674_v45 = vpop.f32.mrf.mxu1 }
 0x1e0   :  { %vm311_vm2 = vcmp.ge.f32.partialorder %v310_v44, 0.0  ;;  %v312_v46 = vmul.f32 0.01, %v310_v44 }
 0x1e1   :  { %v301_v47 = vpop.f32.mrf.mxu1 }
 0x1e2   :  { %v313_v48 = vsel %vm311_vm2, %v310_v44, %v312_v46 }
 0x1e3   :  { %v333_v49 = vpack.c.bf16 %v313_v48, %v313_v48  ;;  %v675_v50 = vpop.f32.mrf.mxu1 }
 0x1e5   :  { %693 = vmatmul.mubr.bf16.vlgmr.msra.gmra.mxu0 %v333_v49 }
 0x2a5   :  { %v416_v54 = vpop.f32.mrf.mxu0 }
 0x2a6   :  { %v428_v55 = vadd.f32 %v590_v53, %v416_v54 }
 0x2a7   :  { %v694_v56 = vpop.f32.mrf.mxu0 }
 0x2a8   :  { %vm429_vm3 = vcmp.ge.f32.partialorder %v428_v55, 0.0  ;;  %v430_v57 = vmul.f32 0.01, %v428_v55 }
 0x2a9   :  { %v419_v58 = vpop.f32.mrf.mxu0 }
 0x2aa   :  { %v431_v59 = vsel %vm429_vm3, %v428_v55, %v430_v57 }
 0x2ab   :  { %v433_v60 = vpack.c.bf16 %v431_v59, %v431_v59  ;;  %v695_v61 = vpop.f32.mrf.mxu0 }
 0x2ad   :  { %713 = vmatmul.mubr.bf16.vlgmr.msra.gmra.mxu1 %v433_v60 }
 0x36d   :  { %v532_v63 = vpop.f32.mrf.mxu1 }
 0x36e   :  { %v544_v0 = vadd.f32 %v599_v62, %v532_v63 }
 0x36f   :  { %v714_v1 = vpop.f32.mrf.mxu1 }
 0x370   :  { %545 = vst [vmem:[#allocation10] sm:$0xff] %v544_v0 }
 0x371   :  { %v535_v2 = vpop.f32.mrf.mxu1 }
 0x372   :  { %848 = shalt.err (!%p845_p10)
}
 0x373   :  { %555 = dma.vmem_to_hbm [thread:$0]  %s553_s27, 128, %s997_s7, [#allocation4]   ;;  %v715_v3 = vpop.f32.mrf.mxu1 }
 0x374   :  { %863 = dma.done.wait [#allocation4], 128  }
 0x375   :  { %864 = vsyncadd [#allocation4], 4294967168 }
 0x376   :  { %559 = vsyncpa [#allocation3], 1 }
 0x377   :  { %560 = vsyncpa [#allocation6], 1 }
 0x378   :  { %561 = vsyncpa [#allocation9], 1 }
 0x379   :  { %562 = vsyncpa [#allocation4], 1 }

</bundles_post_ra>
